<compile_context>
chip_gen: v7x
topology: tpu7x:2x2x1
jax: 0.10.0
libtpu: 0.0.40
codegen_flags: <defaults>
</compile_context>

<pallas_src>
import functools

import numpy as np
import jax
import jax.numpy as jnp
from jax import lax
from jax.experimental import pallas as pl
from jax.experimental.pallas import tpu as pltpu


def lstm_fc_kernel(x_ref, w_ih_ref, w_hh_ref, b_ref, fc_w_ref, fc_b_ref,
                   out_ref, xg_ref):
    """Single-invocation LSTM + fc.

    x_ref    : (T*Bp, I)   time-major rows (row = t*Bp + b), f32
    w_ih_ref : (I, 4H)     input->gates weight (pre-transposed), f32 or bf16
    w_hh_ref : (H, 4H)     hidden->gates weight (pre-transposed), f32 (recurrence)
    b_ref    : (1, 4H)     b_ih + b_hh, f32
    fc_w_ref : (H, O)      fc weight (pre-transposed), f32 or bf16
    fc_b_ref : (1, O)      f32
    out_ref  : (Bp, O)     f32
    xg_ref   : (T, Bp, 4H) VMEM scratch for the hoisted input projection, f32
    """
    T, Bp, four_h = xg_ref.shape
    H = four_h // 4
    in_dt = w_ih_ref.dtype                       # MXU dtype of the big input GEMM

    # One GEMM for the input projection of ALL timesteps, bias folded in once.
    # Staged into VMEM scratch so only one (Bp, 4H) gate block is live per step.
    xg = jnp.dot(x_ref[...].astype(in_dt), w_ih_ref[...],
                 preferred_element_type=jnp.float32) + b_ref[...]      # (T*Bp, 4H)
    xg_ref[...] = xg.reshape(T, Bp, four_h)

    # Recurrence stays fully f32: tiny (H,4H) weight, no per-step quantization
    # of the hidden state (error would otherwise compound over T).
    w_hh = w_hh_ref[...]

    def step(t, carry):
        h, c = carry
        gates = xg_ref[t] + jnp.dot(h, w_hh,
                                    preferred_element_type=jnp.float32)  # (Bp, 4H)
        # Two full-128-lane EUP pushes; H-lane extraction happens afterwards,
        # off the serialized transcendental path.
        sig = jax.nn.sigmoid(gates)
        tnh = jnp.tanh(gates)
        # PyTorch LSTM gate order: input, forget, cell(g), output.
        i_g = sig[:, 0 * H:1 * H]
        f_g = sig[:, 1 * H:2 * H]
        g_g = tnh[:, 2 * H:3 * H]
        o_g = sig[:, 3 * H:4 * H]
        c = f_g * c + i_g * g_g
        h = o_g * jnp.tanh(c)
        return (h, c)

    h0 = jnp.zeros((Bp, H), jnp.float32)
    c0 = jnp.zeros((Bp, H), jnp.float32)
    # Small T: full unroll (LLO scheduler visibility). Large T: moderate unroll
    # so xg / instruction count do not blow up the vreg file / compile time.
    unroll = True if T <= 16 else 4
    h, _ = lax.fori_loop(0, T, step, (h0, c0), unroll=unroll)

    # fc epilogue on the last-timestep hidden state.
    out_ref[...] = (jnp.dot(h.astype(fc_w_ref.dtype), fc_w_ref[...],
                            preferred_element_type=jnp.float32)
                    + fc_b_ref[...]).astype(out_ref.dtype)


def prepare_params(w_ih, w_hh, b, fc_w, fc_b, *, weights_dtype=jnp.bfloat16):
    """Pre-cast weights ONCE at parameter-setup time (not per forward call).

    weights_dtype applies only to the large hoisted input GEMM (w_ih) and the
    fc epilogue (fc_w); the recurrent weight w_hh stays f32 so the hidden-state
    recurrence never quantizes.
    """
    return (jnp.asarray(w_ih, weights_dtype),
            jnp.asarray(w_hh, jnp.float32),
            jnp.asarray(b, jnp.float32),
            jnp.asarray(fc_w, weights_dtype),
            jnp.asarray(fc_b, jnp.float32))


@jax.jit
def my_rnn_forward(x, w_ih, w_hh, b, fc_w, fc_b):
    """x: (B, T, I) batch-first, float32. Returns (B, O). Weights from prepare_params."""
    B, T, I = x.shape
    H = w_hh.shape[0]
    O = fc_w.shape[1]
    Bp = ((B + 7) // 8) * 8                      # pad batch to the 8-sublane granule

    if Bp != B:
        x = jnp.pad(x, ((0, Bp - B), (0, 0), (0, 0)))

    # Time-major 2-D slab (row = t*Bp + b); fuses with the pad under jit.
    x2d = jnp.transpose(x, (1, 0, 2)).reshape(T * Bp, I)

    vmem = pl.BlockSpec(memory_space=pltpu.MemorySpace.VMEM)
    out = pl.pallas_call(
        lstm_fc_kernel,
        out_shape=jax.ShapeDtypeStruct((Bp, O), jnp.float32),
        in_specs=[vmem] * 6,
        out_specs=vmem,
        scratch_shapes=[pltpu.VMEM((T, Bp, 4 * H), jnp.float32)],
    )(x2d, w_ih, w_hh, b, fc_w, fc_b)

    return out[:B]                               # drop padded batch rows


def my_rnn_reference(x, w_ih, w_hh, b, fc_w, fc_b):
    """Pure-JAX f32 reference matching PyTorch LSTM + Linear semantics."""
    B = x.shape[0]
    H = w_hh.shape[0]

    def step(carry, x_t):
        h, c = carry
        gates = x_t @ w_ih + h @ w_hh + b
        i_g = jax.nn.sigmoid(gates[:, 0 * H:1 * H])
        f_g = jax.nn.sigmoid(gates[:, 1 * H:2 * H])
        g_g = jnp.tanh(gates[:, 2 * H:3 * H])
        o_g = jax.nn.sigmoid(gates[:, 3 * H:4 * H])
        c = f_g * c + i_g * g_g
        h = o_g * jnp.tanh(c)
        return (h, c), None

    init = (jnp.zeros((B, H), jnp.float32), jnp.zeros((B, H), jnp.float32))
    (h, _), _ = lax.scan(step, init, jnp.transpose(x, (1, 0, 2)))
    return h @ fc_w + fc_b


if __name__ == "__main__":
    # Small shapes consistent with the module: batch=2, seq=8, input=16, hidden=32, output=8
    B, T, I, H, O = 2, 8, 16, 32, 8

    key = jax.random.PRNGKey(0)
    ks = jax.random.split(key, 7)
    bound = 1.0 / np.sqrt(H)  # PyTorch LSTM / Linear default init range

    x = jax.random.normal(ks[0], (B, T, I), dtype=jnp.float32)

    # LSTM layer-0 params (pre-transposed so the kernel does x @ W, h @ W)
    w_ih = jax.random.uniform(ks[1], (I, 4 * H), jnp.float32, -bound, bound)
    w_hh = jax.random.uniform(ks[2], (H, 4 * H), jnp.float32, -bound, bound)
    b_ih = jax.random.uniform(ks[3], (1, 4 * H), jnp.float32, -bound, bound)
    b_hh = jax.random.uniform(ks[4], (1, 4 * H), jnp.float32, -bound, bound)
    b = b_ih + b_hh

    # fc params
    fc_w = jax.random.uniform(ks[5], (H, O), jnp.float32, -bound, bound)
    fc_b = jax.random.uniform(ks[6], (1, O), jnp.float32, -bound, bound)

    ref = jax.block_until_ready(my_rnn_reference(x, w_ih, w_hh, b, fc_w, fc_b))

    # Exact-semantics check: all-f32 operands, tight tolerance.
    params_f32 = prepare_params(w_ih, w_hh, b, fc_w, fc_b, weights_dtype=jnp.float32)
    out_f32 = jax.block_until_ready(my_rnn_forward(x, *params_f32))
    assert out_f32.shape == (B, O)
    np.testing.assert_allclose(np.asarray(out_f32), np.asarray(ref), rtol=1e-5, atol=1e-5)

    # Performance config: bf16 only for the hoisted input GEMM + fc epilogue;
    # f32 recurrence, gate and state math (v5e-safe: no bf16 VPU/EUP there).
    params_bf16 = prepare_params(w_ih, w_hh, b, fc_w, fc_b, weights_dtype=jnp.bfloat16)
    out_bf16 = jax.block_until_ready(my_rnn_forward(x, *params_bf16))
    assert out_bf16.shape == (B, O)
    np.testing.assert_allclose(np.asarray(out_bf16), np.asarray(ref), rtol=2e-2, atol=2e-2)

    print("KERNEL_OK")
</pallas_src>

<mosaic_0001>
module attributes {stable_mosaic.version = 11 : i64} {
  func.func @lstm_fc_kernel(%arg0: memref<64x16xf32, #tpu.memory_space<vmem>>, %arg1: memref<16x128xf32, #tpu.memory_space<vmem>>, %arg2: memref<32x128xf32, #tpu.memory_space<vmem>>, %arg3: memref<1x128xf32, #tpu.memory_space<vmem>>, %arg4: memref<32x8xf32, #tpu.memory_space<vmem>>, %arg5: memref<1x8xf32, #tpu.memory_space<vmem>>, %arg6: memref<8x8xf32, #tpu.memory_space<vmem>>, %arg7: memref<8x8x128xf32, #tpu.memory_space<vmem>>) attributes {dimension_semantics = [], scalar_prefetch = 0 : i64, scratch_operands = 1 : i64, tpu.core_type = #tpu.core_type<tc>} {
    %c0 = arith.constant 0 : index
    %c0_0 = arith.constant 0 : index
    %0 = vector.load %arg0[%c0, %c0_0] : memref<64x16xf32, #tpu.memory_space<vmem>>, vector<64x16xf32>
    %c0_1 = arith.constant 0 : index
    %c0_2 = arith.constant 0 : index
    %1 = vector.load %arg1[%c0_1, %c0_2] : memref<16x128xf32, #tpu.memory_space<vmem>>, vector<16x128xf32>
    %cst = arith.constant dense<0.000000e+00> : vector<64x128xf32>
    %2 = tpu.matmul %0, %1, %cst {dimension_numbers = #tpu.dot_dimension_numbers<[1], [0], [0], [1], [0, 0, 1, 1], [], []>} : vector<64x16xf32>, vector<16x128xf32>, vector<64x128xf32> -> vector<64x128xf32>
    %c0_3 = arith.constant 0 : index
    %c0_4 = arith.constant 0 : index
    %3 = vector.load %arg3[%c0_3, %c0_4] : memref<1x128xf32, #tpu.memory_space<vmem>>, vector<1x128xf32>
    %4 = vector.broadcast %3 : vector<1x128xf32> to vector<64x128xf32>
    %5 = arith.addf %2, %4 : vector<64x128xf32>
    %6 = vector.shape_cast %5 : vector<64x128xf32> to vector<8x8x128xf32>
    %c0_5 = arith.constant 0 : index
    %c0_6 = arith.constant 0 : index
    %c0_7 = arith.constant 0 : index
    %7 = vector.load %arg7[%c0_5, %c0_6, %c0_7] : memref<8x8x128xf32, #tpu.memory_space<vmem>>, vector<8x8x128xf32>
    tpu.vector_store %arg7[%c0_5, %c0_6, %c0_7], %6 {strides = array<i32>} : memref<8x8x128xf32, #tpu.memory_space<vmem>>, vector<8x8x128xf32>,
    %c0_8 = arith.constant 0 : index
    %c0_9 = arith.constant 0 : index
    %8 = vector.load %arg2[%c0_8, %c0_9] : memref<32x128xf32, #tpu.memory_space<vmem>>, vector<32x128xf32>
    %cst_10 = arith.constant 0.000000e+00 : f32
    %9 = vector.broadcast %cst_10 : f32 to vector<8x32xf32>
    %cst_11 = arith.constant 0.000000e+00 : f32
    %10 = vector.broadcast %cst_11 : f32 to vector<8x32xf32>
    %c0_i32 = arith.constant 0 : i32
    %11 = arith.index_cast %c0_i32 : i32 to index
    %c0_12 = arith.constant 0 : index
    %c0_13 = arith.constant 0 : index
    %12 = vector.load %arg7[%11, %c0_12, %c0_13] : memref<8x8x128xf32, #tpu.memory_space<vmem>>, vector<1x8x128xf32>
    %13 = vector.shape_cast %12 : vector<1x8x128xf32> to vector<8x128xf32>
    %cst_14 = arith.constant dense<0.000000e+00> : vector<8x128xf32>
    %14 = tpu.matmul %9, %8, %cst_14 {dimension_numbers = #tpu.dot_dimension_numbers<[1], [0], [0], [1], [0, 0, 1, 1], [], []>} : vector<8x32xf32>, vector<32x128xf32>, vector<8x128xf32> -> vector<8x128xf32>
    %15 = arith.addf %13, %14 : vector<8x128xf32>
    %16 = arith.negf %15 : vector<8x128xf32>
    %17 = math.exp %16 : vector<8x128xf32>
    %cst_15 = arith.constant 1.000000e+00 : f32
    %18 = vector.broadcast %cst_15 : f32 to vector<8x128xf32>
    %19 = arith.addf %18, %17 : vector<8x128xf32>
    %20 = arith.divf %18, %19 : vector<8x128xf32>
    %21 = math.tanh %15 : vector<8x128xf32>
    %22 = vector.extract_strided_slice %20 {offsets = [0, 0], sizes = [8, 32], strides = [1, 1]} : vector<8x128xf32> to vector<8x32xf32>
    %23 = vector.extract_strided_slice %20 {offsets = [0, 32], sizes = [8, 32], strides = [1, 1]} : vector<8x128xf32> to vector<8x32xf32>
    %24 = vector.extract_strided_slice %21 {offsets = [0, 64], sizes = [8, 32], strides = [1, 1]} : vector<8x128xf32> to vector<8x32xf32>
    %25 = vector.extract_strided_slice %20 {offsets = [0, 96], sizes = [8, 32], strides = [1, 1]} : vector<8x128xf32> to vector<8x32xf32>
    %26 = arith.mulf %23, %10 : vector<8x32xf32>
    %27 = arith.mulf %22, %24 : vector<8x32xf32>
    %28 = arith.addf %26, %27 : vector<8x32xf32>
    %29 = math.tanh %28 : vector<8x32xf32>
    %30 = arith.mulf %25, %29 : vector<8x32xf32>
    %c1_i32 = arith.constant 1 : i32
    %31 = arith.index_cast %c1_i32 : i32 to index
    %c0_16 = arith.constant 0 : index
    %c0_17 = arith.constant 0 : index
    %32 = vector.load %arg7[%31, %c0_16, %c0_17] : memref<8x8x128xf32, #tpu.memory_space<vmem>>, vector<1x8x128xf32>
    %33 = vector.shape_cast %32 : vector<1x8x128xf32> to vector<8x128xf32>
    %cst_18 = arith.constant dense<0.000000e+00> : vector<8x128xf32>
    %34 = tpu.matmul %30, %8, %cst_18 {dimension_numbers = #tpu.dot_dimension_numbers<[1], [0], [0], [1], [0, 0, 1, 1], [], []>} : vector<8x32xf32>, vector<32x128xf32>, vector<8x128xf32> -> vector<8x128xf32>
    %35 = arith.addf %33, %34 : vector<8x128xf32>
    %36 = arith.negf %35 : vector<8x128xf32>
    %37 = math.exp %36 : vector<8x128xf32>
    %cst_19 = arith.constant 1.000000e+00 : f32
    %38 = vector.broadcast %cst_19 : f32 to vector<8x128xf32>
    %39 = arith.addf %38, %37 : vector<8x128xf32>
    %40 = arith.divf %38, %39 : vector<8x128xf32>
    %41 = math.tanh %35 : vector<8x128xf32>
    %42 = vector.extract_strided_slice %40 {offsets = [0, 0], sizes = [8, 32], strides = [1, 1]} : vector<8x128xf32> to vector<8x32xf32>
    %43 = vector.extract_strided_slice %40 {offsets = [0, 32], sizes = [8, 32], strides = [1, 1]} : vector<8x128xf32> to vector<8x32xf32>
    %44 = vector.extract_strided_slice %41 {offsets = [0, 64], sizes = [8, 32], strides = [1, 1]} : vector<8x128xf32> to vector<8x32xf32>
    %45 = vector.extract_strided_slice %40 {offsets = [0, 96], sizes = [8, 32], strides = [1, 1]} : vector<8x128xf32> to vector<8x32xf32>
    %46 = arith.mulf %43, %28 : vector<8x32xf32>
    %47 = arith.mulf %42, %44 : vector<8x32xf32>
    %48 = arith.addf %46, %47 : vector<8x32xf32>
    %49 = math.tanh %48 : vector<8x32xf32>
    %50 = arith.mulf %45, %49 : vector<8x32xf32>
    %c2_i32 = arith.constant 2 : i32
    %51 = arith.index_cast %c2_i32 : i32 to index
    %c0_20 = arith.constant 0 : index
    %c0_21 = arith.constant 0 : index
    %52 = vector.load %arg7[%51, %c0_20, %c0_21] : memref<8x8x128xf32, #tpu.memory_space<vmem>>, vector<1x8x128xf32>
    %53 = vector.shape_cast %52 : vector<1x8x128xf32> to vector<8x128xf32>
    %cst_22 = arith.constant dense<0.000000e+00> : vector<8x128xf32>
    %54 = tpu.matmul %50, %8, %cst_22 {dimension_numbers = #tpu.dot_dimension_numbers<[1], [0], [0], [1], [0, 0, 1, 1], [], []>} : vector<8x32xf32>, vector<32x128xf32>, vector<8x128xf32> -> vector<8x128xf32>
    %55 = arith.addf %53, %54 : vector<8x128xf32>
    %56 = arith.negf %55 : vector<8x128xf32>
    %57 = math.exp %56 : vector<8x128xf32>
    %cst_23 = arith.constant 1.000000e+00 : f32
    %58 = vector.broadcast %cst_23 : f32 to vector<8x128xf32>
    %59 = arith.addf %58, %57 : vector<8x128xf32>
    %60 = arith.divf %58, %59 : vector<8x128xf32>
    %61 = math.tanh %55 : vector<8x128xf32>
    %62 = vector.extract_strided_slice %60 {offsets = [0, 0], sizes = [8, 32], strides = [1, 1]} : vector<8x128xf32> to vector<8x32xf32>
    %63 = vector.extract_strided_slice %60 {offsets = [0, 32], sizes = [8, 32], strides = [1, 1]} : vector<8x128xf32> to vector<8x32xf32>
    %64 = vector.extract_strided_slice %61 {offsets = [0, 64], sizes = [8, 32], strides = [1, 1]} : vector<8x128xf32> to vector<8x32xf32>
    %65 = vector.extract_strided_slice %60 {offsets = [0, 96], sizes = [8, 32], strides = [1, 1]} : vector<8x128xf32> to vector<8x32xf32>
    %66 = arith.mulf %63, %48 : vector<8x32xf32>
    %67 = arith.mulf %62, %64 : vector<8x32xf32>
    %68 = arith.addf %66, %67 : vector<8x32xf32>
    %69 = math.tanh %68 : vector<8x32xf32>
    %70 = arith.mulf %65, %69 : vector<8x32xf32>
    %c3_i32 = arith.constant 3 : i32
    %71 = arith.index_cast %c3_i32 : i32 to index
    %c0_24 = arith.constant 0 : index
    %c0_25 = arith.constant 0 : index
    %72 = vector.load %arg7[%71, %c0_24, %c0_25] : memref<8x8x128xf32, #tpu.memory_space<vmem>>, vector<1x8x128xf32>
    %73 = vector.shape_cast %72 : vector<1x8x128xf32> to vector<8x128xf32>
    %cst_26 = arith.constant dense<0.000000e+00> : vector<8x128xf32>
    %74 = tpu.matmul %70, %8, %cst_26 {dimension_numbers = #tpu.dot_dimension_numbers<[1], [0], [0], [1], [0, 0, 1, 1], [], []>} : vector<8x32xf32>, vector<32x128xf32>, vector<8x128xf32> -> vector<8x128xf32>
    %75 = arith.addf %73, %74 : vector<8x128xf32>
    %76 = arith.negf %75 : vector<8x128xf32>
    %77 = math.exp %76 : vector<8x128xf32>
    %cst_27 = arith.constant 1.000000e+00 : f32
    %78 = vector.broadcast %cst_27 : f32 to vector<8x128xf32>
    %79 = arith.addf %78, %77 : vector<8x128xf32>
    %80 = arith.divf %78, %79 : vector<8x128xf32>
    %81 = math.tanh %75 : vector<8x128xf32>
    %82 = vector.extract_strided_slice %80 {offsets = [0, 0], sizes = [8, 32], strides = [1, 1]} : vector<8x128xf32> to vector<8x32xf32>
    %83 = vector.extract_strided_slice %80 {offsets = [0, 32], sizes = [8, 32], strides = [1, 1]} : vector<8x128xf32> to vector<8x32xf32>
    %84 = vector.extract_strided_slice %81 {offsets = [0, 64], sizes = [8, 32], strides = [1, 1]} : vector<8x128xf32> to vector<8x32xf32>
    %85 = vector.extract_strided_slice %80 {offsets = [0, 96], sizes = [8, 32], strides = [1, 1]} : vector<8x128xf32> to vector<8x32xf32>
    %86 = arith.mulf %83, %68 : vector<8x32xf32>
    %87 = arith.mulf %82, %84 : vector<8x32xf32>
    %88 = arith.addf %86, %87 : vector<8x32xf32>
    %89 = math.tanh %88 : vector<8x32xf32>
    %90 = arith.mulf %85, %89 : vector<8x32xf32>
    %c4_i32 = arith.constant 4 : i32
    %91 = arith.index_cast %c4_i32 : i32 to index
    %c0_28 = arith.constant 0 : index
    %c0_29 = arith.constant 0 : index
    %92 = vector.load %arg7[%91, %c0_28, %c0_29] : memref<8x8x128xf32, #tpu.memory_space<vmem>>, vector<1x8x128xf32>
    %93 = vector.shape_cast %92 : vector<1x8x128xf32> to vector<8x128xf32>
    %cst_30 = arith.constant dense<0.000000e+00> : vector<8x128xf32>
    %94 = tpu.matmul %90, %8, %cst_30 {dimension_numbers = #tpu.dot_dimension_numbers<[1], [0], [0], [1], [0, 0, 1, 1], [], []>} : vector<8x32xf32>, vector<32x128xf32>, vector<8x128xf32> -> vector<8x128xf32>
    %95 = arith.addf %93, %94 : vector<8x128xf32>
    %96 = arith.negf %95 : vector<8x128xf32>
    %97 = math.exp %96 : vector<8x128xf32>
    %cst_31 = arith.constant 1.000000e+00 : f32
    %98 = vector.broadcast %cst_31 : f32 to vector<8x128xf32>
    %99 = arith.addf %98, %97 : vector<8x128xf32>
    %100 = arith.divf %98, %99 : vector<8x128xf32>
    %101 = math.tanh %95 : vector<8x128xf32>
    %102 = vector.extract_strided_slice %100 {offsets = [0, 0], sizes = [8, 32], strides = [1, 1]} : vector<8x128xf32> to vector<8x32xf32>
    %103 = vector.extract_strided_slice %100 {offsets = [0, 32], sizes = [8, 32], strides = [1, 1]} : vector<8x128xf32> to vector<8x32xf32>
    %104 = vector.extract_strided_slice %101 {offsets = [0, 64], sizes = [8, 32], strides = [1, 1]} : vector<8x128xf32> to vector<8x32xf32>
    %105 = vector.extract_strided_slice %100 {offsets = [0, 96], sizes = [8, 32], strides = [1, 1]} : vector<8x128xf32> to vector<8x32xf32>
    %106 = arith.mulf %103, %88 : vector<8x32xf32>
    %107 = arith.mulf %102, %104 : vector<8x32xf32>
    %108 = arith.addf %106, %107 : vector<8x32xf32>
    %109 = math.tanh %108 : vector<8x32xf32>
    %110 = arith.mulf %105, %109 : vector<8x32xf32>
    %c5_i32 = arith.constant 5 : i32
    %111 = arith.index_cast %c5_i32 : i32 to index
    %c0_32 = arith.constant 0 : index
    %c0_33 = arith.constant 0 : index
    %112 = vector.load %arg7[%111, %c0_32, %c0_33] : memref<8x8x128xf32, #tpu.memory_space<vmem>>, vector<1x8x128xf32>
    %113 = vector.shape_cast %112 : vector<1x8x128xf32> to vector<8x128xf32>
    %cst_34 = arith.constant dense<0.000000e+00> : vector<8x128xf32>
    %114 = tpu.matmul %110, %8, %cst_34 {dimension_numbers = #tpu.dot_dimension_numbers<[1], [0], [0], [1], [0, 0, 1, 1], [], []>} : vector<8x32xf32>, vector<32x128xf32>, vector<8x128xf32> -> vector<8x128xf32>
    %115 = arith.addf %113, %114 : vector<8x128xf32>
    %116 = arith.negf %115 : vector<8x128xf32>
    %117 = math.exp %116 : vector<8x128xf32>
    %cst_35 = arith.constant 1.000000e+00 : f32
    %118 = vector.broadcast %cst_35 : f32 to vector<8x128xf32>
    %119 = arith.addf %118, %117 : vector<8x128xf32>
    %120 = arith.divf %118, %119 : vector<8x128xf32>
    %121 = math.tanh %115 : vector<8x128xf32>
    %122 = vector.extract_strided_slice %120 {offsets = [0, 0], sizes = [8, 32], strides = [1, 1]} : vector<8x128xf32> to vector<8x32xf32>
    %123 = vector.extract_strided_slice %120 {offsets = [0, 32], sizes = [8, 32], strides = [1, 1]} : vector<8x128xf32> to vector<8x32xf32>
    %124 = vector.extract_strided_slice %121 {offsets = [0, 64], sizes = [8, 32], strides = [1, 1]} : vector<8x128xf32> to vector<8x32xf32>
    %125 = vector.extract_strided_slice %120 {offsets = [0, 96], sizes = [8, 32], strides = [1, 1]} : vector<8x128xf32> to vector<8x32xf32>
    %126 = arith.mulf %123, %108 : vector<8x32xf32>
    %127 = arith.mulf %122, %124 : vector<8x32xf32>
    %128 = arith.addf %126, %127 : vector<8x32xf32>
    %129 = math.tanh %128 : vector<8x32xf32>
    %130 = arith.mulf %125, %129 : vector<8x32xf32>
    %c6_i32 = arith.constant 6 : i32
    %131 = arith.index_cast %c6_i32 : i32 to index
    %c0_36 = arith.constant 0 : index
    %c0_37 = arith.constant 0 : index
    %132 = vector.load %arg7[%131, %c0_36, %c0_37] : memref<8x8x128xf32, #tpu.memory_space<vmem>>, vector<1x8x128xf32>
    %133 = vector.shape_cast %132 : vector<1x8x128xf32> to vector<8x128xf32>
    %cst_38 = arith.constant dense<0.000000e+00> : vector<8x128xf32>
    %134 = tpu.matmul %130, %8, %cst_38 {dimension_numbers = #tpu.dot_dimension_numbers<[1], [0], [0], [1], [0, 0, 1, 1], [], []>} : vector<8x32xf32>, vector<32x128xf32>, vector<8x128xf32> -> vector<8x128xf32>
    %135 = arith.addf %133, %134 : vector<8x128xf32>
    %136 = arith.negf %135 : vector<8x128xf32>
    %137 = math.exp %136 : vector<8x128xf32>
    %cst_39 = arith.constant 1.000000e+00 : f32
    %138 = vector.broadcast %cst_39 : f32 to vector<8x128xf32>
    %139 = arith.addf %138, %137 : vector<8x128xf32>
    %140 = arith.divf %138, %139 : vector<8x128xf32>
    %141 = math.tanh %135 : vector<8x128xf32>
    %142 = vector.extract_strided_slice %140 {offsets = [0, 0], sizes = [8, 32], strides = [1, 1]} : vector<8x128xf32> to vector<8x32xf32>
    %143 = vector.extract_strided_slice %140 {offsets = [0, 32], sizes = [8, 32], strides = [1, 1]} : vector<8x128xf32> to vector<8x32xf32>
    %144 = vector.extract_strided_slice %141 {offsets = [0, 64], sizes = [8, 32], strides = [1, 1]} : vector<8x128xf32> to vector<8x32xf32>
    %145 = vector.extract_strided_slice %140 {offsets = [0, 96], sizes = [8, 32], strides = [1, 1]} : vector<8x128xf32> to vector<8x32xf32>
    %146 = arith.mulf %143, %128 : vector<8x32xf32>
    %147 = arith.mulf %142, %144 : vector<8x32xf32>
    %148 = arith.addf %146, %147 : vector<8x32xf32>
    %149 = math.tanh %148 : vector<8x32xf32>
    %150 = arith.mulf %145, %149 : vector<8x32xf32>
    %c7_i32 = arith.constant 7 : i32
    %151 = arith.index_cast %c7_i32 : i32 to index
    %c0_40 = arith.constant 0 : index
    %c0_41 = arith.constant 0 : index
    %152 = vector.load %arg7[%151, %c0_40, %c0_41] : memref<8x8x128xf32, #tpu.memory_space<vmem>>, vector<1x8x128xf32>
    %153 = vector.shape_cast %152 : vector<1x8x128xf32> to vector<8x128xf32>
    %cst_42 = arith.constant dense<0.000000e+00> : vector<8x128xf32>
    %154 = tpu.matmul %150, %8, %cst_42 {dimension_numbers = #tpu.dot_dimension_numbers<[1], [0], [0], [1], [0, 0, 1, 1], [], []>} : vector<8x32xf32>, vector<32x128xf32>, vector<8x128xf32> -> vector<8x128xf32>
    %155 = arith.addf %153, %154 : vector<8x128xf32>
    %156 = arith.negf %155 : vector<8x128xf32>
    %157 = math.exp %156 : vector<8x128xf32>
    %cst_43 = arith.constant 1.000000e+00 : f32
    %158 = vector.broadcast %cst_43 : f32 to vector<8x128xf32>
    %159 = arith.addf %158, %157 : vector<8x128xf32>
    %160 = arith.divf %158, %159 : vector<8x128xf32>
    %161 = math.tanh %155 : vector<8x128xf32>
    %162 = vector.extract_strided_slice %160 {offsets = [0, 0], sizes = [8, 32], strides = [1, 1]} : vector<8x128xf32> to vector<8x32xf32>
    %163 = vector.extract_strided_slice %160 {offsets = [0, 32], sizes = [8, 32], strides = [1, 1]} : vector<8x128xf32> to vector<8x32xf32>
    %164 = vector.extract_strided_slice %161 {offsets = [0, 64], sizes = [8, 32], strides = [1, 1]} : vector<8x128xf32> to vector<8x32xf32>
    %165 = vector.extract_strided_slice %160 {offsets = [0, 96], sizes = [8, 32], strides = [1, 1]} : vector<8x128xf32> to vector<8x32xf32>
    %166 = arith.mulf %163, %148 : vector<8x32xf32>
    %167 = arith.mulf %162, %164 : vector<8x32xf32>
    %168 = arith.addf %166, %167 : vector<8x32xf32>
    %169 = math.tanh %168 : vector<8x32xf32>
    %170 = arith.mulf %165, %169 : vector<8x32xf32>
    %c8_i32 = arith.constant 8 : i32
    %c0_44 = arith.constant 0 : index
    %c0_45 = arith.constant 0 : index
    %171 = vector.load %arg4[%c0_44, %c0_45] : memref<32x8xf32, #tpu.memory_space<vmem>>, vector<32x8xf32>
    %cst_46 = arith.constant dense<0.000000e+00> : vector<8x8xf32>
    %172 = tpu.matmul %170, %171, %cst_46 {dimension_numbers = #tpu.dot_dimension_numbers<[1], [0], [0], [1], [0, 0, 1, 1], [], []>} : vector<8x32xf32>, vector<32x8xf32>, vector<8x8xf32> -> vector<8x8xf32>
    %c0_47 = arith.constant 0 : index
    %c0_48 = arith.constant 0 : index
    %173 = vector.load %arg5[%c0_47, %c0_48] : memref<1x8xf32, #tpu.memory_space<vmem>>, vector<1x8xf32>
    %174 = vector.broadcast %173 : vector<1x8xf32> to vector<8x8xf32>
    %175 = arith.addf %172, %174 : vector<8x8xf32>
    %c0_49 = arith.constant 0 : index
    %c0_50 = arith.constant 0 : index
    %176 = vector.load %arg6[%c0_49, %c0_50] : memref<8x8xf32, #tpu.memory_space<vmem>>, vector<8x8xf32>
    tpu.vector_store %arg6[%c0_49, %c0_50], %175 {strides = array<i32>} : memref<8x8xf32, #tpu.memory_space<vmem>>, vector<8x8xf32>,
    return
  }
}

</mosaic_0001>

<bundles_post_ra>
// kernel: my_rnn_forward.1
= control target key start
LH: loop header
LB: loop body
LE: loop exit
PB: predicated region body
PF: predicated region fallthrough
CT: control target
= control target key end

     0   :  { %vm40_vm0 = vcmask 130048   ;;  %v1411_v0 = vmov 0.0|0.0   ;;  %vm1412_vm1 = vmmov 0   ;;  %v1413_v4 = vmov 0.0   ;;  %s1414_s13 = smov 64   ;;  %s1641_s1 = inlined_call_operand.vmem [shape: f32[16,128], index: 1, kind: input, shape index: {}]   ;;  %s1642_s2 = inlined_call_operand.vmem [shape: f32[32,128], index: 2, kind: input, shape index: {}]   ;;  %s1643_s0 = inlined_call_operand.vmem [shape: f32[64,16], index: 0, kind: input, shape index: {}]   ;;  %s1644_s3 = inlined_call_operand.vmem [shape: f32[1,128], index: 3, kind: input, shape index: {}]   ;;  %s1645_s4 = inlined_call_operand.vmem [shape: f32[32,8], index: 4, kind: input, shape index: {}]   ;;  %s1646_s5 = inlined_call_operand.vmem [shape: f32[1,8], index: 5, kind: input, shape index: {}]   ;;  %s1647_s6 = inlined_call_operand.vmem [shape: f32[8,8], index: 6, kind: output, shape index: {}]  }
   0x1   :  { %1288 = vmatprep.subr.bf16.mxu1 %v1411_v0  ;;  %v31_v1 = vld [vmem:[%s1641_s1] sm:$0xff]  ;;  %v32_v2 = vld [vmem:[%s1641_s1 + $0x8] sm:$0xff]  ;;  %1193 = vmatprep.mubr.msk.f32.mxu1 %vm1412_vm1, %v1413_v4  ;;  %v180_v9 = vld [vmem:[%s1642_s2 + $0x10] sm:$0xff]  ;;  %vm183_vm2 = vcmask 261120   ;;  %vm1082_vm3 = vcmask 64512  }
   0x2   :  { %v178_v3 = vld [vmem:[%s1642_s2] sm:$0xff]  ;;  %v1284_v5 = vpack.c.bf16 %v32_v2, %v31_v1  ;;  %v179_v6 = vld [vmem:[%s1642_s2 + $0x8] sm:$0xff]  ;;  %v181_v10 = vld [vmem:[%s1642_s2 + $0x18] sm:$0xff] }
   0x3   :  { %v23_v7 = vld [vmem:[%s1643_s0] sm:$0xff]  ;;  %v1469_v8 = vpack.c.bf16 %v179_v6, %v178_v3  ;;  %v24_v11 = vld [vmem:[%s1643_s0 + $0x8] sm:$0xff]  ;;  %v1482_v12 = vpack.c.bf16 %v181_v10, %v180_v9  ;;  %v25_v48 = vld [vmem:[%s1643_s0 + $0x10] sm:$0xff] }
   0x4   :  { %1173 = vmatprep.mubr.msk.f32.mxu0 %vm40_vm0, %v23_v7  ;;  %1285 = vmatprep.subr.bf16.mxu0 %v1284_v5  ;;  %v1503_v13 = vld [vmem:[%s1644_s3] ss:$0 sm:$0xff]  ;;  %s1415_s3 = smov 32   ;;  %v26_v49 = vld [vmem:[%s1643_s0 + $0x18] sm:$0xff]  ;;  %v28_v51 = vld [vmem:[%s1643_s0 + $0x28] sm:$0xff] }
   0x5   :  { %1290 = vmatpush3.bf16.msra.mxu1 %v1469_v8  ;;  %1287 = vmatpush3.bf16.msra.mxu0 %v1284_v5  ;;  %v27_v50 = vld [vmem:[%s1643_s0 + $0x20] sm:$0xff]  ;;  %v29_v52 = vld [vmem:[%s1643_s0 + $0x30] sm:$0xff]  ;;  %v30_v53 = vld [vmem:[%s1643_s0 + $0x38] sm:$0xff] }
   0x6   :  { %1291 = vmatprep.subr.bf16.mxu1 %v1411_v0  ;;  %1300 = vmatprep.subr.bf16.mxu0 %v1411_v0 }
   0x8   :  { %1174 = vmatmul.mubr.msk.f32.vlgmr.msra.gmra.mrb[0].mxu0 %vm40_vm0, %v24_v11 }
   0x9   :  { %1293 = vmatpush3.bf16.msra.mxu1 %v1482_v12  ;;  %1302 = vmatpush3.bf16.msra.mxu0 %v1469_v8 }
   0xa   :  { %1294 = vmatprep.subr.bf16.mxu1 %v1411_v0  ;;  %1303 = vmatprep.subr.bf16.mxu0 %v1411_v0 }
   0xb   :  { %1176 = vmatprep.mubr.msk.f32.mxu0 %vm40_vm0, %v25_v48 }
   0xc   :  { %1194 = vmatmul.mubr.f32.vlgmr.msra.gmra.mrb[0].mxu1 %v1413_v4  ;;  %1177 = vmatmul.mubr.msk.f32.gmra.mrb[2].mxu0 %vm40_vm0, %v26_v49 }
   0xd   :  { %1296 = vmatpush3.bf16.msra.mxu1 %v1469_v8  ;;  %1204 = vmatprep.mubr.msk.f32.mxu1 %vm1412_vm1, %v1413_v4 }
   0xe   :  { %1297 = vmatprep.subr.bf16.mxu1 %v1411_v0  ;;  %1305 = vmatpush3.bf16.msra.mxu0 %v1482_v12 }
   0xf   :  { %1312 = vmatprep.subr.bf16.mxu0 %v1411_v0  ;;  %1179 = vmatprep.mubr.msk.f32.mxu0 %vm40_vm0, %v27_v50 }
  0x10   :  { %1180 = vmatmul.mubr.msk.f32.gmra.mrb[4].mxu0 %vm40_vm0, %v28_v51 }
  0x11   :  { %1299 = vmatpush3.bf16.msra.mxu1 %v1482_v12  ;;  %1182 = vmatprep.mubr.msk.f32.mxu0 %vm40_vm0, %v29_v52 }
  0x12   :  { %1306 = vmatprep.subr.bf16.mxu1 %v1411_v0 }
  0x14   :  { %1183 = vmatmul.mubr.msk.f32.gmra.mrb[6].mxu0 %vm40_vm0, %v30_v53 }
  0x15   :  { %1215 = vmatprep.mubr.msk.f32.mxu0 %vm1412_vm1, %v1413_v4 }
  0xdb   :  { %v1175_v14 = vpop.f32.mrb[0].mxu0 }
  0xdc   :  { %v131_v15 = vpop.f32.mrb[1].mxu0  ;;  %v137_v34 = vadd.f32 %v1175_v14, %v1503_v13 }
  0xdd   :  { %v132_v16 = vadd.f32 %v1503_v13, %v131_v15 }
  0xdf   :  { %v253_v17 = vpop.f32.mrb[0].mxu1  ;;  %v1178_v57 = vpop.f32.mrb[2].mxu0 }
  0xe0   :  { %v257_v18 = vadd.f32 %v253_v17, %v132_v16  ;;  %v1195_v19 = vpop.f32.mrb[1].mxu1  ;;  %v141_v58 = vpop.f32.mrb[3].mxu0 }
  0xe1   :  { %v142_v1 = vadd.f32 %v1503_v13, %v141_v58 }
  0xe2   :  { %1347 = vtanh.f32 %v257_v18  ;;  %v1097_v21 = vmul.f32 -1.442695, %v257_v18 }
  0xe3   :  { %v1548_v59 = vpop.f32.mrb[4].mxu0 }
  0xe4   :  { %1349 = vpow2.f32 %v1097_v21  ;;  %v1550_v60 = vpop.f32.mrb[5].mxu0 }
  0xe7   :  { %v1552_v61 = vpop.f32.mrb[6].mxu0 }
  0xe8   :  { %v1554_v62 = vpop.f32.mrb[7].mxu0 }
  0xec   :  { %v1348_v20 = vpop.eup %1347 }
  0xed   :  { %267 = vrot.lane.b32.xlu0 %v1348_v20, %s1414_s13 }
  0xee   :  { %v1350_v22 = vpop.eup %1349 }
  0xef   :  { %v261_v23 = vadd.f32 1.0, %v1350_v22 }
  0xf1   :  { %1351 = vrcp.f32 %v261_v23  ;;  %v147_v23 = vadd.f32 %v1178_v57, %v1503_v13 }
  0xfb   :  { %v1352_v24 = vpop.eup %1351 }
  0xfc   :  { %v265_v27 = vmul.f32 0.0, %v1352_v24 }
 0x15f   :  { %v268_v25 = vpop.permute.xlu0 %267 }
 0x160   :  { %v270_v26 = vmul.f32 %v1352_v24, %v268_v25 }
 0x162   :  { %272 = vrot.lane.b32.xlu0 %v270_v26, %s1415_s3 }
 0x1d4   :  { %v273_v28 = vpop.permute.xlu0 %272 }
 0x1d5   :  { %v275_v29 = vadd.f32 %v273_v28, %v265_v27 }
 0x1d7   :  { %1353 = vtanh.f32 %v275_v29 }
 0x1e1   :  { %v1354_v30 = vpop.eup %1353 }
 0x1e2   :  { %278 = vrot.lane.b32.xlu1 %v1354_v30, %s1414_s13 }
 0x254   :  { %v279_v31 = vpop.permute.xlu1 %278 }
 0x255   :  { %v281_v32 = vmul.f32 %v1352_v24, %v279_v31 }
 0x257   :  { %285 = vrot.lane.b32.xlu1 %v281_v32, %s1415_s3 }
 0x2c9   :  { %v286_v33 = vpop.permute.xlu1 %285 }
 0x2ca   :  { %1205 = vmatmul.mubr.msk.f32.vlgmr.msra.gmra.mrb[2].mxu1 %vm183_vm2, %v286_v33 }
 0x2cb   :  { %1308 = vmatpush3.bf16.msra.mxu1 %v1469_v8  ;;  %1226 = vmatprep.mubr.msk.f32.mxu1 %vm1412_vm1, %v1413_v4 }
 0x2cc   :  { %1309 = vmatprep.subr.bf16.mxu1 %v1411_v0 }
 0x2cf   :  { %1311 = vmatpush3.bf16.msra.mxu1 %v1482_v12 }
 0x2d0   :  { %1318 = vmatprep.subr.bf16.mxu1 %v1411_v0 }
 0x39d   :  { %v355_v35 = vpop.f32.mrb[2].mxu1 }
 0x39e   :  { %v359_v36 = vadd.f32 %v355_v35, %v137_v34  ;;  %v1206_v37 = vpop.f32.mrb[3].mxu1 }
 0x3a0   :  { %1355 = vtanh.f32 %v359_v36  ;;  %v1099_v39 = vmul.f32 -1.442695, %v359_v36 }
 0x3a2   :  { %1357 = vpow2.f32 %v1099_v39 }
 0x3aa   :  { %v1356_v38 = vpop.eup %1355 }
 0x3ab   :  { %369 = vrot.lane.b32.xlu0 %v1356_v38, %s1414_s13 }
 0x3ac   :  { %v1358_v40 = vpop.eup %1357 }
 0x3ad   :  { %v363_v41 = vadd.f32 1.0, %v1358_v40 }
 0x3af   :  { %1359 = vrcp.f32 %v363_v41  ;;  %v152_v41 = vadd.f32 %v1503_v13, %v1550_v60  ;;  %v157_v60 = vadd.f32 %v1548_v59, %v1503_v13 }
 0x3b9   :  { %v1360_v42 = vpop.eup %1359 }
 0x3ba   :  { %v367_v45 = vmul.f32 %v1360_v42, %v275_v29 }
 0x41d   :  { %v370_v43 = vpop.permute.xlu0 %369 }
 0x41e   :  { %v372_v44 = vmul.f32 %v1360_v42, %v370_v43 }
 0x420   :  { %374 = vrot.lane.b32.xlu1 %v372_v44, %s1415_s3 }
 0x492   :  { %v375_v46 = vpop.permute.xlu1 %374 }
 0x493   :  { %v377_v47 = vadd.f32 %v375_v46, %v367_v45 }
 0x495   :  { %1361 = vtanh.f32 %v377_v47 }
 0x49f   :  { %v1362_v54 = vpop.eup %1361 }
 0x4a0   :  { %380 = vrot.lane.b32.xlu0 %v1362_v54, %s1414_s13 }
 0x512   :  { %v381_v55 = vpop.permute.xlu0 %380 }
 0x513   :  { %v383_v56 = vmul.f32 %v1360_v42, %v381_v55 }
 0x515   :  { %387 = vrot.lane.b32.xlu1 %v383_v56, %s1415_s3 }
 0x587   :  { %v388_v63 = vpop.permute.xlu1 %387 }
 0x588   :  { %1216 = vmatmul.mubr.msk.f32.vlgmr.msra.gmra.mrb[8].mxu0 %vm183_vm2, %v388_v63 }
 0x589   :  { %1314 = vmatpush3.bf16.msra.mxu0 %v1469_v8  ;;  %1237 = vmatprep.mubr.msk.f32.mxu0 %vm1412_vm1, %v1413_v4 }
 0x58a   :  { %1315 = vmatprep.subr.bf16.mxu0 %v1411_v0 }
 0x58d   :  { %1317 = vmatpush3.bf16.msra.mxu0 %v1482_v12 }
 0x58e   :  { %1324 = vmatprep.subr.bf16.mxu0 %v1411_v0 }
 0x65b   :  { %v457_v2 = vpop.f32.mrb[8].mxu0 }
 0x65c   :  { %v461_v3 = vadd.f32 %v457_v2, %v142_v1  ;;  %v1217_v5 = vpop.f32.mrb[9].mxu0 }
 0x65e   :  { %1363 = vtanh.f32 %v461_v3  ;;  %v1101_v7 = vmul.f32 -1.442695, %v461_v3 }
 0x660   :  { %1365 = vpow2.f32 %v1101_v7 }
 0x668   :  { %v1364_v6 = vpop.eup %1363 }
 0x669   :  { %471 = vrot.lane.b32.xlu0 %v1364_v6, %s1414_s13 }
 0x66a   :  { %v1366_v9 = vpop.eup %1365 }
 0x66b   :  { %v465_v10 = vadd.f32 1.0, %v1366_v9 }
 0x66d   :  { %1367 = vrcp.f32 %v465_v10 }
 0x677   :  { %v1368_v11 = vpop.eup %1367 }
 0x678   :  { %v469_v16 = vmul.f32 %v1368_v11, %v377_v47 }
 0x6db   :  { %v472_v14 = vpop.permute.xlu0 %471 }
 0x6dc   :  { %v474_v15 = vmul.f32 %v1368_v11, %v472_v14 }
 0x6de   :  { %476 = vrot.lane.b32.xlu1 %v474_v15, %s1415_s3 }
 0x750   :  { %v477_v17 = vpop.permute.xlu1 %476 }
 0x751   :  { %v479_v18 = vadd.f32 %v477_v17, %v469_v16 }
 0x753   :  { %1369 = vtanh.f32 %v479_v18 }
 0x75d   :  { %v1370_v19 = vpop.eup %1369 }
 0x75e   :  { %482 = vrot.lane.b32.xlu0 %v1370_v19, %s1414_s13 }
 0x7d0   :  { %v483_v20 = vpop.permute.xlu0 %482 }
 0x7d1   :  { %v485_v21 = vmul.f32 %v1368_v11, %v483_v20 }
 0x7d3   :  { %489 = vrot.lane.b32.xlu1 %v485_v21, %s1415_s3 }
 0x845   :  { %v490_v22 = vpop.permute.xlu1 %489 }
 0x846   :  { %1227 = vmatmul.mubr.msk.f32.vlgmr.msra.gmra.mrb[4].mxu1 %vm183_vm2, %v490_v22 }
 0x847   :  { %1320 = vmatpush3.bf16.msra.mxu1 %v1469_v8  ;;  %1248 = vmatprep.mubr.msk.f32.mxu1 %vm1412_vm1, %v1413_v4 }
 0x848   :  { %1321 = vmatprep.subr.bf16.mxu1 %v1411_v0 }
 0x84b   :  { %1323 = vmatpush3.bf16.msra.mxu1 %v1482_v12 }
 0x84c   :  { %1330 = vmatprep.subr.bf16.mxu1 %v1411_v0 }
 0x919   :  { %v559_v24 = vpop.f32.mrb[4].mxu1 }
 0x91a   :  { %v563_v25 = vadd.f32 %v559_v24, %v147_v23  ;;  %v1228_v26 = vpop.f32.mrb[5].mxu1 }
 0x91c   :  { %1371 = vtanh.f32 %v563_v25  ;;  %v1103_v28 = vmul.f32 -1.442695, %v563_v25 }
 0x91e   :  { %1373 = vpow2.f32 %v1103_v28 }
 0x926   :  { %v1372_v27 = vpop.eup %1371 }
 0x927   :  { %573 = vrot.lane.b32.xlu0 %v1372_v27, %s1414_s13 }
 0x928   :  { %v1374_v29 = vpop.eup %1373 }
 0x929   :  { %v567_v30 = vadd.f32 1.0, %v1374_v29 }
 0x92b   :  { %1375 = vrcp.f32 %v567_v30 }
 0x935   :  { %v1376_v31 = vpop.eup %1375 }
 0x936   :  { %v571_v34 = vmul.f32 %v1376_v31, %v479_v18  ;;  %v162_v18 = vadd.f32 %v1503_v13, %v1554_v62 }
 0x999   :  { %v574_v32 = vpop.permute.xlu0 %573 }
 0x99a   :  { %v576_v33 = vmul.f32 %v1376_v31, %v574_v32 }
 0x99c   :  { %578 = vrot.lane.b32.xlu1 %v576_v33, %s1415_s3 }
 0xa0e   :  { %v579_v35 = vpop.permute.xlu1 %578 }
 0xa0f   :  { %v581_v36 = vadd.f32 %v579_v35, %v571_v34  ;;  %v167_v34 = vadd.f32 %v1552_v61, %v1503_v13  ;;  %v996_v61 = vld [vmem:[%s1645_s4] sm:$0xff] }
 0xa11   :  { %1377 = vtanh.f32 %v581_v36 }
 0xa1b   :  { %v1378_v37 = vpop.eup %1377 }
 0xa1c   :  { %584 = vrot.lane.b32.xlu0 %v1378_v37, %s1414_s13 }
 0xa8e   :  { %v585_v38 = vpop.permute.xlu0 %584 }
 0xa8f   :  { %v587_v39 = vmul.f32 %v1376_v31, %v585_v38 }
 0xa91   :  { %591 = vrot.lane.b32.xlu1 %v587_v39, %s1415_s3 }
 0xb03   :  { %v592_v40 = vpop.permute.xlu1 %591 }
 0xb04   :  { %1238 = vmatmul.mubr.msk.f32.vlgmr.msra.gmra.mrb[10].mxu0 %vm183_vm2, %v592_v40 }
 0xb05   :  { %1326 = vmatpush3.bf16.msra.mxu0 %v1469_v8  ;;  %1259 = vmatprep.mubr.msk.f32.mxu0 %vm1412_vm1, %v1413_v4 }
 0xb06   :  { %1327 = vmatprep.subr.bf16.mxu0 %v1411_v0 }
 0xb09   :  { %1329 = vmatpush3.bf16.msra.mxu0 %v1482_v12 }
 0xb0a   :  { %1336 = vmatprep.subr.bf16.mxu0 %v1411_v0 }
 0xbd7   :  { %v661_v42 = vpop.f32.mrb[10].mxu0 }
 0xbd8   :  { %v665_v43 = vadd.f32 %v661_v42, %v152_v41  ;;  %v1239_v44 = vpop.f32.mrb[11].mxu0 }
 0xbda   :  { %1379 = vtanh.f32 %v665_v43  ;;  %v1105_v46 = vmul.f32 -1.442695, %v665_v43 }
 0xbdc   :  { %1381 = vpow2.f32 %v1105_v46 }
 0xbe4   :  { %v1380_v45 = vpop.eup %1379 }
 0xbe5   :  { %675 = vrot.lane.b32.xlu0 %v1380_v45, %s1414_s13 }
 0xbe6   :  { %v1382_v47 = vpop.eup %1381 }
 0xbe7   :  { %v669_v48 = vadd.f32 1.0, %v1382_v47  ;;  %v997_v47 = vld [vmem:[%s1645_s4 + $0x8] sm:$0xff] }
 0xbe9   :  { %1383 = vrcp.f32 %v669_v48  ;;  %v998_v48 = vld [vmem:[%s1645_s4 + $0x10] sm:$0xff] }
 0xbf3   :  { %v1384_v49 = vpop.eup %1383 }
 0xbf4   :  { %v673_v52 = vmul.f32 %v1384_v49, %v581_v36 }
 0xc57   :  { %v676_v50 = vpop.permute.xlu0 %675 }
 0xc58   :  { %v678_v51 = vmul.f32 %v1384_v49, %v676_v50  ;;  %v999_v50 = vld [vmem:[%s1645_s4 + $0x18] sm:$0xff] }
 0xc5a   :  { %680 = vrot.lane.b32.xlu1 %v678_v51, %s1415_s3  ;;  %v1340_v51 = vpack.c.bf16 %v999_v50, %v998_v48 }
 0xccc   :  { %v681_v53 = vpop.permute.xlu1 %680 }
 0xccd   :  { %v683_v54 = vadd.f32 %v681_v53, %v673_v52 }
 0xccf   :  { %1385 = vtanh.f32 %v683_v54 }
 0xcd9   :  { %v1386_v55 = vpop.eup %1385 }
 0xcda   :  { %686 = vrot.lane.b32.xlu0 %v1386_v55, %s1414_s13 }
 0xd4c   :  { %v687_v56 = vpop.permute.xlu0 %686 }
 0xd4d   :  { %v689_v57 = vmul.f32 %v1384_v49, %v687_v56  ;;  %v1337_v49 = vpack.c.bf16 %v997_v47, %v996_v61  ;;  %v1112_v56 = vld [vmem:[%s1646_s5] ss:$0 sm:$0xff] }
 0xd4f   :  { %693 = vrot.lane.b32.xlu1 %v689_v57, %s1415_s3 }
 0xdc1   :  { %v694_v58 = vpop.permute.xlu1 %693 }
 0xdc2   :  { %1249 = vmatmul.mubr.msk.f32.vlgmr.msra.gmra.mrb[6].mxu1 %vm183_vm2, %v694_v58 }
 0xdc3   :  { %1332 = vmatpush3.bf16.msra.mxu1 %v1469_v8  ;;  %1270 = vmatprep.mubr.msk.f32.mxu1 %vm1412_vm1, %v1413_v4 }
 0xdc4   :  { %1333 = vmatprep.subr.bf16.mxu1 %v1411_v0 }
 0xdc7   :  { %1335 = vmatpush3.bf16.msra.mxu1 %v1482_v12 }
 0xe95   :  { %v763_v63 = vpop.f32.mrb[6].mxu1 }
 0xe96   :  { %v767_v1 = vadd.f32 %v763_v63, %v157_v60  ;;  %v1250_v2 = vpop.f32.mrb[7].mxu1 }
 0xe98   :  { %1387 = vtanh.f32 %v767_v1  ;;  %v1107_v5 = vmul.f32 -1.442695, %v767_v1 }
 0xe9a   :  { %1389 = vpow2.f32 %v1107_v5 }
 0xea2   :  { %v1388_v3 = vpop.eup %1387 }
 0xea3   :  { %777 = vrot.lane.b32.xlu0 %v1388_v3, %s1414_s13 }
 0xea4   :  { %v1390_v8 = vpop.eup %1389 }
 0xea5   :  { %v771_v6 = vadd.f32 1.0, %v1390_v8 }
 0xea7   :  { %1391 = vrcp.f32 %v771_v6 }
 0xeb1   :  { %v1392_v7 = vpop.eup %1391 }
 0xeb2   :  { %v775_v12 = vmul.f32 %v1392_v7, %v683_v54 }
 0xf15   :  { %v778_v9 = vpop.permute.xlu0 %777 }
 0xf16   :  { %v780_v10 = vmul.f32 %v1392_v7, %v778_v9 }
 0xf18   :  { %782 = vrot.lane.b32.xlu1 %v780_v10, %s1415_s3 }
 0xf8a   :  { %v783_v11 = vpop.permute.xlu1 %782 }
 0xf8b   :  { %v785_v59 = vadd.f32 %v783_v11, %v775_v12 }
 0xf8d   :  { %1393 = vtanh.f32 %v785_v59 }
 0xf97   :  { %v1394_v14 = vpop.eup %1393 }
 0xf98   :  { %788 = vrot.lane.b32.xlu0 %v1394_v14, %s1414_s13 }
0x100a   :  { %v789_v15 = vpop.permute.xlu0 %788 }
0x100b   :  { %v791_v16 = vmul.f32 %v1392_v7, %v789_v15 }
0x100d   :  { %795 = vrot.lane.b32.xlu1 %v791_v16, %s1415_s3 }
0x107f   :  { %v796_v17 = vpop.permute.xlu1 %795 }
0x1080   :  { %1260 = vmatmul.mubr.msk.f32.vlgmr.msra.gmra.mrb[12].mxu0 %vm183_vm2, %v796_v17 }
0x1081   :  { %1281 = vmatprep.mubr.msk.f32.mxu0 %vm1412_vm1, %v1413_v4  ;;  %1338 = vmatpush3.bf16.msra.mxu0 %v1337_v49 }
0x1082   :  { %1339 = vmatprep.subr.bf16.mxu0 %v1411_v0 }
0x1085   :  { %1341 = vmatpush3.bf16.msra.mxu0 %v1340_v51 }
0x1153   :  { %v865_v19 = vpop.f32.mrb[12].mxu0 }
0x1154   :  { %v869_v20 = vadd.f32 %v865_v19, %v162_v18  ;;  %v1261_v21 = vpop.f32.mrb[13].mxu0 }
0x1156   :  { %1395 = vtanh.f32 %v869_v20  ;;  %v1109_v23 = vmul.f32 -1.442695, %v869_v20 }
0x1158   :  { %1397 = vpow2.f32 %v1109_v23 }
0x1160   :  { %v1396_v22 = vpop.eup %1395 }
0x1161   :  { %879 = vrot.lane.b32.xlu0 %v1396_v22, %s1414_s13 }
0x1162   :  { %v1398_v24 = vpop.eup %1397 }
0x1163   :  { %v873_v25 = vadd.f32 1.0, %v1398_v24 }
0x1165   :  { %1399 = vrcp.f32 %v873_v25 }
0x116f   :  { %v1400_v26 = vpop.eup %1399 }
0x1170   :  { %v877_v4 = vmul.f32 %v1400_v26, %v785_v59 }
0x11d3   :  { %v880_v27 = vpop.permute.xlu0 %879 }
0x11d4   :  { %v882_v28 = vmul.f32 %v1400_v26, %v880_v27 }
0x11d6   :  { %884 = vrot.lane.b32.xlu1 %v882_v28, %s1415_s3 }
0x1248   :  { %v885_v29 = vpop.permute.xlu1 %884 }
0x1249   :  { %v887_v62 = vadd.f32 %v885_v29, %v877_v4 }
0x124b   :  { %1401 = vtanh.f32 %v887_v62 }
0x1255   :  { %v1402_v30 = vpop.eup %1401 }
0x1256   :  { %890 = vrot.lane.b32.xlu0 %v1402_v30, %s1414_s13 }
0x12c8   :  { %v891_v31 = vpop.permute.xlu0 %890 }
0x12c9   :  { %v893_v32 = vmul.f32 %v1400_v26, %v891_v31 }
0x12cb   :  { %897 = vrot.lane.b32.xlu1 %v893_v32, %s1415_s3 }
0x133d   :  { %v898_v33 = vpop.permute.xlu1 %897 }
0x133e   :  { %1271 = vmatmul.mubr.msk.f32.vlgmr.msra.gmra.mrb[8].mxu1 %vm183_vm2, %v898_v33 }
0x1411   :  { %v967_v35 = vpop.f32.mrb[8].mxu1 }
0x1412   :  { %v971_v36 = vadd.f32 %v967_v35, %v167_v34  ;;  %v1272_v37 = vpop.f32.mrb[9].mxu1 }
0x1414   :  { %1403 = vtanh.f32 %v971_v36  ;;  %v1111_v39 = vmul.f32 -1.442695, %v971_v36 }
0x1416   :  { %1405 = vpow2.f32 %v1111_v39 }
0x141e   :  { %v1404_v38 = vpop.eup %1403 }
0x141f   :  { %981 = vrot.lane.b32.xlu0 %v1404_v38, %s1414_s13 }
0x1420   :  { %v1406_v40 = vpop.eup %1405 }
0x1421   :  { %v975_v41 = vadd.f32 1.0, %v1406_v40 }
0x1423   :  { %1407 = vrcp.f32 %v975_v41 }
0x142d   :  { %v1408_v42 = vpop.eup %1407 }
0x142e   :  { %v979_v45 = vmul.f32 %v1408_v42, %v887_v62 }
0x1491   :  { %v982_v43 = vpop.permute.xlu0 %981 }
0x1492   :  { %v984_v44 = vmul.f32 %v1408_v42, %v982_v43 }
0x1494   :  { %986 = vrot.lane.b32.xlu1 %v984_v44, %s1415_s3 }
0x1506   :  { %v987_v46 = vpop.permute.xlu1 %986 }
0x1507   :  { %v989_v13 = vadd.f32 %v987_v46, %v979_v45 }
0x1509   :  { %1409 = vtanh.f32 %v989_v13 }
0x1513   :  { %v1410_v52 = vpop.eup %1409 }
0x1514   :  { %992 = vrot.lane.b32.xlu0 %v1410_v52, %s1414_s13 }
0x1586   :  { %v993_v53 = vpop.permute.xlu0 %992 }
0x1587   :  { %v995_v54 = vmul.f32 %v1408_v42, %v993_v53 }
0x1589   :  { %1008 = vrot.lane.b32.xlu1 %v995_v54, %s1415_s3 }
0x15fb   :  { %v1009_v55 = vpop.permute.xlu1 %1008 }
0x15fc   :  { %1282 = vmatmul.mubr.msk.f32.vlgmr.msra.gmra.mrb[14].mxu0 %vm183_vm2, %v1009_v55 }
0x16cf   :  { %v1078_v57 = vpop.f32.mrb[14].mxu0 }
0x16d0   :  { %v1079_v58 = vadd.f32 %v1112_v56, %v1078_v57  ;;  %v1283_v60 = vpop.f32.mrb[15].mxu0 }
0x16d2   :  { %1083 = vst.msk [vmem:[%s1647_s6] sm:$0xff] %vm1082_vm3, %v1079_v58 }

</bundles_post_ra>
